<compile_context>
chip_gen: v6e
topology: v6e:2x2x1
jax: 0.10.0
libtpu: 0.0.40
codegen_flags: <defaults>
</compile_context>

<pallas_src>
import functools

import jax
import jax.numpy as jnp
from jax.experimental import pallas as pl
from jax.experimental.pallas import tpu as pltpu


def _round_up(x, m):
    return (x + m - 1) // m * m


def _conv_taps_kernel(w_ref, x_ref, o_ref, *, tap_offsets, p_tile, n_p):
    """One (batch, pixel-tile) grid step.

    w_ref: (T, Cout, Cin_eff)   bf16  -- per-tap weight slices (VMEM-resident).
    x_ref: (Cin_eff, Pp)        bf16  -- whole flattened padded image of this
                                          batch element (resident across pixel tiles).
    o_ref: (Cout, p_tile)       out dtype -- lane-dense output tile.
    """
    if n_p == 1:
        q0 = 0  # fully static slices when there is a single pixel tile
    else:
        q0 = pl.multiple_of(pl.program_id(1) * p_tile, 128)
    acc = jnp.zeros(o_ref.shape, jnp.float32)
    for t, base in enumerate(tap_offsets):          # static, unrolled tap loop
        xs = x_ref[:, pl.ds(q0 + base, p_tile)]     # (Cin_eff, p_tile)
        acc = acc + jnp.dot(w_ref[t], xs, preferred_element_type=jnp.float32)
    o_ref[...] = jnp.maximum(acc, 0.0).astype(o_ref.dtype)


def _conv_flat_matmul(w_taps, x_flat, tap_offsets, n_valid_out, out_dtype,
                      p_tile_target=2048):
    """relu( sum_t W_t @ shift(x_flat, tap_offsets[t]) ) over a flat pixel axis."""
    N, cin_eff, p_in = x_flat.shape
    T, cout, _ = w_taps.shape

    p_tile = min(p_tile_target, _round_up(n_valid_out, 128))
    l_out = _round_up(n_valid_out, p_tile)
    n_p = l_out // p_tile
    max_base = max(tap_offsets)
    pp = _round_up(l_out + max_base, 128)
    if pp > p_in:
        x_flat = jnp.pad(x_flat, ((0, 0), (0, 0), (0, pp - p_in)))

    in_itemsize = jnp.dtype(x_flat.dtype).itemsize
    out_itemsize = jnp.dtype(out_dtype).itemsize

    # VMEM budget: double-buffered input/output blocks + resident weights + acc.
    xb = _round_up(cin_eff, 8) * pp * in_itemsize
    wb = T * _round_up(cout, 8) * _round_up(cin_eff, 128) * in_itemsize
    ob = _round_up(cout, 8) * p_tile * out_itemsize
    accb = _round_up(cout, 8) * p_tile * 4
    vmem_limit = int(min(max(2 * (xb + ob) + wb + accb + (4 << 20), 16 << 20),
                         64 << 20))

    kernel = functools.partial(_conv_taps_kernel,
                               tap_offsets=tuple(int(o) for o in tap_offsets),
                               p_tile=p_tile, n_p=n_p)

    return pl.pallas_call(
        kernel,
        out_shape=jax.ShapeDtypeStruct((N, cout, l_out), out_dtype),
        grid_spec=pltpu.PrefetchScalarGridSpec(
            num_scalar_prefetch=0,
            grid=(N, n_p),
            in_specs=[
                # weights: fetched once, resident across the whole grid
                pl.BlockSpec((T, cout, cin_eff), lambda n, p: (0, 0, 0)),
                # flat padded image: resident across pixel tiles of batch n
                pl.BlockSpec((pl.Squeezed(), cin_eff, pp), lambda n, p: (n, 0, 0)),
            ],
            out_specs=pl.BlockSpec((pl.Squeezed(), cout, p_tile),
                                   lambda n, p: (n, 0, p)),
        ),
        compiler_params=pltpu.CompilerParams(
            dimension_semantics=("parallel", "parallel"),
            vmem_limit_bytes=vmem_limit),
        cost_estimate=pl.CostEstimate(
            flops=2 * N * T * cout * cin_eff * l_out,
            transcendentals=0,
            bytes_accessed=(N * cin_eff * pp * in_itemsize
                            + T * cout * cin_eff * in_itemsize
                            + N * cout * l_out * out_itemsize)),
    )(w_taps, x_flat)


def basic_conv2d(x_nchw, weight, *, stride=1, padding=0, dilation=1,
                 compute_dtype=jnp.bfloat16, out_dtype=None,
                 p_tile_target=2048):
    """Conv2d(bias=False) + ReLU.  x_nchw: (N, Cin, H, W), weight: (Cout, Cin, KH, KW)."""
    N, Cin, H, W = x_nchw.shape
    Cout, Cin_w, KH, KW = weight.shape
    assert Cin == Cin_w
    out_dtype = x_nchw.dtype if out_dtype is None else out_dtype

    Hout = (H + 2 * padding - dilation * (KH - 1) - 1) // stride + 1
    Wout = (W + 2 * padding - dilation * (KW - 1) - 1) // stride + 1

    x = x_nchw.astype(compute_dtype)
    x_pad = jnp.pad(x, ((0, 0), (0, 0), (padding, padding), (padding, padding)))
    Hp, Wp = H + 2 * padding, W + 2 * padding

    if stride == 1:
        # Flatten padded pixels (pure reshape); each tap (kh, kw) is a constant
        # lane offset kh*d*Wp + kw*d into the flat image.  Output rows are
        # computed with pitch Wp; the Wp-Wout throwaway columns are cropped below.
        x_flat = x_pad.reshape(N, Cin, Hp * Wp)
        tap_offsets = [kh * dilation * Wp + kw * dilation
                       for kh in range(KH) for kw in range(KW)]
        w_taps = jnp.transpose(weight, (2, 3, 0, 1)).reshape(
            KH * KW, Cout, Cin).astype(compute_dtype)
        row_pitch = Wp
    else:
        # TODO(synk): stride > 1 uses a wrapper-side im2col (one extra HBM pass);
        # replace with a phase-decomposed in-kernel path for strided convs.
        taps = []
        for kh in range(KH):
            for kw in range(KW):
                h0, w0 = kh * dilation, kw * dilation
                taps.append(x_pad[:, :,
                                  h0:h0 + (Hout - 1) * stride + 1:stride,
                                  w0:w0 + (Wout - 1) * stride + 1:stride])
        x_flat = jnp.stack(taps, axis=1).reshape(N, KH * KW * Cin, Hout * Wout)
        tap_offsets = [0]
        w_taps = jnp.transpose(weight, (0, 2, 3, 1)).reshape(
            1, Cout, KH * KW * Cin).astype(compute_dtype)
        row_pitch = Wout

    out_flat = _conv_flat_matmul(w_taps, x_flat, tap_offsets,
                                 n_valid_out=Hout * row_pitch,
                                 out_dtype=out_dtype,
                                 p_tile_target=p_tile_target)
    # Crop the padded lane tail + gap columns; pure reshape otherwise (no transpose).
    out = out_flat[:, :, :Hout * row_pitch].reshape(N, Cout, Hout, row_pitch)
    return out[:, :, :, :Wout]


if __name__ == "__main__":
    key = jax.random.PRNGKey(0)
    kx, kw3, kw1 = jax.random.split(key, 3)

    # BasicConv2d(in_planes=4, out_planes=8, kernel_size=3, stride=1, padding=1)
    N, Cin, H, W = 2, 4, 16, 16
    Cout, K = 8, 3
    stride, padding, dilation = 1, 1, 1

    x = jax.random.normal(kx, (N, Cin, H, W), dtype=jnp.float32)
    fan_in = Cin * K * K
    bound = (1.0 / fan_in) ** 0.5
    w3 = jax.random.uniform(kw3, (Cout, Cin, K, K),
                            minval=-bound, maxval=bound, dtype=jnp.float32)

    conv3 = jax.jit(functools.partial(
        basic_conv2d, stride=stride, padding=padding, dilation=dilation))
    out3 = jax.block_until_ready(conv3(x, w3))

    ref3 = jax.lax.conv_general_dilated(
        x.astype(jnp.bfloat16), w3.astype(jnp.bfloat16),
        window_strides=(stride, stride),
        padding=[(padding, padding), (padding, padding)],
        rhs_dilation=(dilation, dilation),
        dimension_numbers=("NCHW", "OIHW", "NCHW"),
        preferred_element_type=jnp.float32)
    ref3 = jnp.maximum(ref3, 0.0)
    assert out3.shape == ref3.shape, (out3.shape, ref3.shape)
    err3 = float(jnp.max(jnp.abs(out3.astype(jnp.float32) - ref3)))
    assert jnp.allclose(out3.astype(jnp.float32), ref3, atol=1e-2, rtol=1e-2), err3

    # 1x1 conv (most common Inception layer): single-tap, no gap columns.
    w1 = jax.random.uniform(kw1, (Cout, Cin, 1, 1),
                            minval=-0.5, maxval=0.5, dtype=jnp.float32)
    conv1 = jax.jit(basic_conv2d)
    out1 = jax.block_until_ready(conv1(x, w1))
    ref1 = jnp.maximum(jax.lax.conv_general_dilated(
        x.astype(jnp.bfloat16), w1.astype(jnp.bfloat16),
        window_strides=(1, 1), padding=[(0, 0), (0, 0)],
        dimension_numbers=("NCHW", "OIHW", "NCHW"),
        preferred_element_type=jnp.float32), 0.0)
    assert out1.shape == ref1.shape, (out1.shape, ref1.shape)
    err1 = float(jnp.max(jnp.abs(out1.astype(jnp.float32) - ref1)))
    assert jnp.allclose(out1.astype(jnp.float32), ref1, atol=1e-2, rtol=1e-2), err1

    print("KERNEL_OK")
</pallas_src>

<mosaic_0001>
module attributes {stable_mosaic.version = 11 : i64} {
  func.func @_conv_taps_kernel(%arg0: i32, %arg1: i32, %arg2: memref<9x8x4xbf16, #tpu.memory_space<vmem>>, %arg3: memref<1x4x512xbf16, #tpu.memory_space<vmem>>, %arg4: memref<1x8x384xf32, #tpu.memory_space<vmem>>) attributes {dimension_semantics = [#tpu.dimension_semantics<parallel>, #tpu.dimension_semantics<parallel>], iteration_bounds = array<i64: 2, 1>, scalar_prefetch = 0 : i64, scratch_operands = 0 : i64, tpu.core_type = #tpu.core_type<tc>, window_params = [{pipeline_mode = #tpu.pipeline_mode<synchronous>, transform_indices = @transform_0, window_bounds = array<i64: 9, 8, 4>}, {transform_indices = @transform_1, window_bounds = array<i64: 1, 4, 512>}, {transform_indices = @transform_2, window_bounds = array<i64: 1, 8, 384>}]} {
    %cst = arith.constant 0.000000e+00 : f32
    %0 = vector.broadcast %cst : f32 to vector<8x384xf32>
    %c0 = arith.constant 0 : index
    %c0_0 = arith.constant 0 : index
    %c0_1 = arith.constant 0 : index
    %1 = vector.load %arg3[%c0, %c0_0, %c0_1] : memref<1x4x512xbf16, #tpu.memory_space<vmem>>, vector<1x4x384xbf16>
    %2 = vector.shape_cast %1 : vector<1x4x384xbf16> to vector<4x384xbf16>
    %c0_2 = arith.constant 0 : index
    %c0_3 = arith.constant 0 : index
    %c0_4 = arith.constant 0 : index
    %3 = vector.load %arg2[%c0_2, %c0_3, %c0_4] : memref<9x8x4xbf16, #tpu.memory_space<vmem>>, vector<1x8x4xbf16>
    %4 = vector.shape_cast %3 : vector<1x8x4xbf16> to vector<8x4xbf16>
    %cst_5 = arith.constant dense<0.000000e+00> : vector<8x384xf32>
    %5 = tpu.matmul %4, %2, %cst_5 {dimension_numbers = #tpu.dot_dimension_numbers<[1], [0], [0], [1], [0, 0, 1, 1], [], []>} : vector<8x4xbf16>, vector<4x384xbf16>, vector<8x384xf32> -> vector<8x384xf32>
    %6 = arith.addf %0, %5 : vector<8x384xf32>
    %c0_6 = arith.constant 0 : index
    %c0_7 = arith.constant 0 : index
    %c1 = arith.constant 1 : index
    %7 = vector.load %arg3[%c0_6, %c0_7, %c1] : memref<1x4x512xbf16, #tpu.memory_space<vmem>>, vector<1x4x384xbf16>
    %8 = vector.shape_cast %7 : vector<1x4x384xbf16> to vector<4x384xbf16>
    %c1_8 = arith.constant 1 : index
    %c0_9 = arith.constant 0 : index
    %c0_10 = arith.constant 0 : index
    %9 = vector.load %arg2[%c1_8, %c0_9, %c0_10] : memref<9x8x4xbf16, #tpu.memory_space<vmem>>, vector<1x8x4xbf16>
    %10 = vector.shape_cast %9 : vector<1x8x4xbf16> to vector<8x4xbf16>
    %cst_11 = arith.constant dense<0.000000e+00> : vector<8x384xf32>
    %11 = tpu.matmul %10, %8, %cst_11 {dimension_numbers = #tpu.dot_dimension_numbers<[1], [0], [0], [1], [0, 0, 1, 1], [], []>} : vector<8x4xbf16>, vector<4x384xbf16>, vector<8x384xf32> -> vector<8x384xf32>
    %12 = arith.addf %6, %11 : vector<8x384xf32>
    %c0_12 = arith.constant 0 : index
    %c0_13 = arith.constant 0 : index
    %c2 = arith.constant 2 : index
    %13 = vector.load %arg3[%c0_12, %c0_13, %c2] : memref<1x4x512xbf16, #tpu.memory_space<vmem>>, vector<1x4x384xbf16>
    %14 = vector.shape_cast %13 : vector<1x4x384xbf16> to vector<4x384xbf16>
    %c2_14 = arith.constant 2 : index
    %c0_15 = arith.constant 0 : index
    %c0_16 = arith.constant 0 : index
    %15 = vector.load %arg2[%c2_14, %c0_15, %c0_16] : memref<9x8x4xbf16, #tpu.memory_space<vmem>>, vector<1x8x4xbf16>
    %16 = vector.shape_cast %15 : vector<1x8x4xbf16> to vector<8x4xbf16>
    %cst_17 = arith.constant dense<0.000000e+00> : vector<8x384xf32>
    %17 = tpu.matmul %16, %14, %cst_17 {dimension_numbers = #tpu.dot_dimension_numbers<[1], [0], [0], [1], [0, 0, 1, 1], [], []>} : vector<8x4xbf16>, vector<4x384xbf16>, vector<8x384xf32> -> vector<8x384xf32>
    %18 = arith.addf %12, %17 : vector<8x384xf32>
    %c0_18 = arith.constant 0 : index
    %c0_19 = arith.constant 0 : index
    %c18 = arith.constant 18 : index
    %19 = vector.load %arg3[%c0_18, %c0_19, %c18] : memref<1x4x512xbf16, #tpu.memory_space<vmem>>, vector<1x4x384xbf16>
    %20 = vector.shape_cast %19 : vector<1x4x384xbf16> to vector<4x384xbf16>
    %c3 = arith.constant 3 : index
    %c0_20 = arith.constant 0 : index
    %c0_21 = arith.constant 0 : index
    %21 = vector.load %arg2[%c3, %c0_20, %c0_21] : memref<9x8x4xbf16, #tpu.memory_space<vmem>>, vector<1x8x4xbf16>
    %22 = vector.shape_cast %21 : vector<1x8x4xbf16> to vector<8x4xbf16>
    %cst_22 = arith.constant dense<0.000000e+00> : vector<8x384xf32>
    %23 = tpu.matmul %22, %20, %cst_22 {dimension_numbers = #tpu.dot_dimension_numbers<[1], [0], [0], [1], [0, 0, 1, 1], [], []>} : vector<8x4xbf16>, vector<4x384xbf16>, vector<8x384xf32> -> vector<8x384xf32>
    %24 = arith.addf %18, %23 : vector<8x384xf32>
    %c0_23 = arith.constant 0 : index
    %c0_24 = arith.constant 0 : index
    %c19 = arith.constant 19 : index
    %25 = vector.load %arg3[%c0_23, %c0_24, %c19] : memref<1x4x512xbf16, #tpu.memory_space<vmem>>, vector<1x4x384xbf16>
    %26 = vector.shape_cast %25 : vector<1x4x384xbf16> to vector<4x384xbf16>
    %c4 = arith.constant 4 : index
    %c0_25 = arith.constant 0 : index
    %c0_26 = arith.constant 0 : index
    %27 = vector.load %arg2[%c4, %c0_25, %c0_26] : memref<9x8x4xbf16, #tpu.memory_space<vmem>>, vector<1x8x4xbf16>
    %28 = vector.shape_cast %27 : vector<1x8x4xbf16> to vector<8x4xbf16>
    %cst_27 = arith.constant dense<0.000000e+00> : vector<8x384xf32>
    %29 = tpu.matmul %28, %26, %cst_27 {dimension_numbers = #tpu.dot_dimension_numbers<[1], [0], [0], [1], [0, 0, 1, 1], [], []>} : vector<8x4xbf16>, vector<4x384xbf16>, vector<8x384xf32> -> vector<8x384xf32>
    %30 = arith.addf %24, %29 : vector<8x384xf32>
    %c0_28 = arith.constant 0 : index
    %c0_29 = arith.constant 0 : index
    %c20 = arith.constant 20 : index
    %31 = vector.load %arg3[%c0_28, %c0_29, %c20] : memref<1x4x512xbf16, #tpu.memory_space<vmem>>, vector<1x4x384xbf16>
    %32 = vector.shape_cast %31 : vector<1x4x384xbf16> to vector<4x384xbf16>
    %c5 = arith.constant 5 : index
    %c0_30 = arith.constant 0 : index
    %c0_31 = arith.constant 0 : index
    %33 = vector.load %arg2[%c5, %c0_30, %c0_31] : memref<9x8x4xbf16, #tpu.memory_space<vmem>>, vector<1x8x4xbf16>
    %34 = vector.shape_cast %33 : vector<1x8x4xbf16> to vector<8x4xbf16>
    %cst_32 = arith.constant dense<0.000000e+00> : vector<8x384xf32>
    %35 = tpu.matmul %34, %32, %cst_32 {dimension_numbers = #tpu.dot_dimension_numbers<[1], [0], [0], [1], [0, 0, 1, 1], [], []>} : vector<8x4xbf16>, vector<4x384xbf16>, vector<8x384xf32> -> vector<8x384xf32>
    %36 = arith.addf %30, %35 : vector<8x384xf32>
    %c0_33 = arith.constant 0 : index
    %c0_34 = arith.constant 0 : index
    %c36 = arith.constant 36 : index
    %37 = vector.load %arg3[%c0_33, %c0_34, %c36] : memref<1x4x512xbf16, #tpu.memory_space<vmem>>, vector<1x4x384xbf16>
    %38 = vector.shape_cast %37 : vector<1x4x384xbf16> to vector<4x384xbf16>
    %c6 = arith.constant 6 : index
    %c0_35 = arith.constant 0 : index
    %c0_36 = arith.constant 0 : index
    %39 = vector.load %arg2[%c6, %c0_35, %c0_36] : memref<9x8x4xbf16, #tpu.memory_space<vmem>>, vector<1x8x4xbf16>
    %40 = vector.shape_cast %39 : vector<1x8x4xbf16> to vector<8x4xbf16>
    %cst_37 = arith.constant dense<0.000000e+00> : vector<8x384xf32>
    %41 = tpu.matmul %40, %38, %cst_37 {dimension_numbers = #tpu.dot_dimension_numbers<[1], [0], [0], [1], [0, 0, 1, 1], [], []>} : vector<8x4xbf16>, vector<4x384xbf16>, vector<8x384xf32> -> vector<8x384xf32>
    %42 = arith.addf %36, %41 : vector<8x384xf32>
    %c0_38 = arith.constant 0 : index
    %c0_39 = arith.constant 0 : index
    %c37 = arith.constant 37 : index
    %43 = vector.load %arg3[%c0_38, %c0_39, %c37] : memref<1x4x512xbf16, #tpu.memory_space<vmem>>, vector<1x4x384xbf16>
    %44 = vector.shape_cast %43 : vector<1x4x384xbf16> to vector<4x384xbf16>
    %c7 = arith.constant 7 : index
    %c0_40 = arith.constant 0 : index
    %c0_41 = arith.constant 0 : index
    %45 = vector.load %arg2[%c7, %c0_40, %c0_41] : memref<9x8x4xbf16, #tpu.memory_space<vmem>>, vector<1x8x4xbf16>
    %46 = vector.shape_cast %45 : vector<1x8x4xbf16> to vector<8x4xbf16>
    %cst_42 = arith.constant dense<0.000000e+00> : vector<8x384xf32>
    %47 = tpu.matmul %46, %44, %cst_42 {dimension_numbers = #tpu.dot_dimension_numbers<[1], [0], [0], [1], [0, 0, 1, 1], [], []>} : vector<8x4xbf16>, vector<4x384xbf16>, vector<8x384xf32> -> vector<8x384xf32>
    %48 = arith.addf %42, %47 : vector<8x384xf32>
    %c0_43 = arith.constant 0 : index
    %c0_44 = arith.constant 0 : index
    %c38 = arith.constant 38 : index
    %49 = vector.load %arg3[%c0_43, %c0_44, %c38] : memref<1x4x512xbf16, #tpu.memory_space<vmem>>, vector<1x4x384xbf16>
    %50 = vector.shape_cast %49 : vector<1x4x384xbf16> to vector<4x384xbf16>
    %c8 = arith.constant 8 : index
    %c0_45 = arith.constant 0 : index
    %c0_46 = arith.constant 0 : index
    %51 = vector.load %arg2[%c8, %c0_45, %c0_46] : memref<9x8x4xbf16, #tpu.memory_space<vmem>>, vector<1x8x4xbf16>
    %52 = vector.shape_cast %51 : vector<1x8x4xbf16> to vector<8x4xbf16>
    %cst_47 = arith.constant dense<0.000000e+00> : vector<8x384xf32>
    %53 = tpu.matmul %52, %50, %cst_47 {dimension_numbers = #tpu.dot_dimension_numbers<[1], [0], [0], [1], [0, 0, 1, 1], [], []>} : vector<8x4xbf16>, vector<4x384xbf16>, vector<8x384xf32> -> vector<8x384xf32>
    %54 = arith.addf %48, %53 : vector<8x384xf32>
    %cst_48 = arith.constant 0.000000e+00 : f32
    %55 = vector.broadcast %cst_48 : f32 to vector<8x384xf32>
    %56 = arith.maximumf %54, %55 : vector<8x384xf32>
    %c0_49 = arith.constant 0 : index
    %c0_50 = arith.constant 0 : index
    %c0_51 = arith.constant 0 : index
    %57 = vector.load %arg4[%c0_49, %c0_50, %c0_51] : memref<1x8x384xf32, #tpu.memory_space<vmem>>, vector<1x8x384xf32>
    %58 = vector.shape_cast %57 : vector<1x8x384xf32> to vector<8x384xf32>
    %59 = vector.shape_cast %56 : vector<8x384xf32> to vector<1x8x384xf32>
    tpu.vector_store %arg4[%c0_49, %c0_50, %c0_51], %59 {strides = array<i32>} : memref<1x8x384xf32, #tpu.memory_space<vmem>>, vector<1x8x384xf32>,
    return
  }
  func.func @transform_0(%arg0: i32, %arg1: i32) -> (i32, i32, i32) {
    %c0_i32 = arith.constant 0 : i32
    %c0_i32_0 = arith.constant 0 : i32
    %c0_i32_1 = arith.constant 0 : i32
    %c0_i32_2 = arith.constant 0 : i32
    return %c0_i32, %c0_i32_0, %c0_i32_1 : i32, i32, i32
  }
  func.func @transform_1(%arg0: i32, %arg1: i32) -> (i32, i32, i32) {
    %c0_i32 = arith.constant 0 : i32
    %c0_i32_0 = arith.constant 0 : i32
    %c0_i32_1 = arith.constant 0 : i32
    return %arg0, %c0_i32, %c0_i32_0 : i32, i32, i32
  }
  func.func @transform_2(%arg0: i32, %arg1: i32) -> (i32, i32, i32) {
    %c0_i32 = arith.constant 0 : i32
    %c0_i32_0 = arith.constant 0 : i32
    return %arg0, %c0_i32, %arg1 : i32, i32, i32
  }
}

</mosaic_0001>

<bundles_post_ra>
// kernel: basic_conv2d.1
= control target key start
LH: loop header
LB: loop body
LE: loop exit
PB: predicated region body
PF: predicated region fallthrough
CT: control target
= control target key end

     0   :  { %s1606_s9 = smov 0   ;;  %s1608_s10 = smov 0   ;;  %s1759_s0 = inlined_call_operand.vmem [shape: bf16[9,8,4], index: 0, kind: input, shape index: {}]   ;;  %s1760_s1 = inlined_call_operand.vmem [shape: bf16[2,4,512], index: 1, kind: input, shape index: {}]   ;;  %s1761_s2 = inlined_call_operand.vmem [shape: f32[2,8,384], index: 2, kind: output, shape index: {}]  }
   0x1   :  { %s1610_s11 = smov 0  }
   0x2 LB: > { %s24_s12 = sadd.s32 1, %s1573_s10  ;;  %p1402_p0 = scmp.ge.s32.totalorder %s1577_s11, 1  ;;  %s1577_s11 = sphi %s1610_s11, %s12_s11   ;;  %s1573_s10 = sphi %s1608_s10, %s1763_s10   ;;  %s1569_s9 = sphi %s1606_s9, %s1762_s9  }
   0x3   : > { %p26_p1 = scmp.ge.s32.totalorder %s24_s12, 2  ;;  %p126_p2 = scmp.lt.s32.totalorder %s1577_s11, 3 }
   0x5   : > { %s1765_s12 = smov (%p26_p1, %s24_s12), 0  ;;  %p127_p3 = pnand %p1402_p0, %p126_p2 }
   0x6   : > { %p152_p4 = scmp.lt.s32.totalorder (!%p127_p3), %s1569_s9, 1  ;;  %s1583_s17 = smov (!%p127_p3), 127  }
   0x7   : > { %130 = sbr.rel (%p127_p3) target bundleno = 409 (0x199), region = 28  ;;  %s1584_s18 = smov (!%p127_p3), 126  }
   0x8   : > { %s1585_s19 = smov (!%p127_p3), 110   ;;  %s1586_s20 = smov (!%p127_p3), 109  }
   0x9   : > { %s1587_s21 = smov (!%p127_p3), 108   ;;  %s1588_s22 = smov (!%p127_p3), 92  }
   0xa   : > { %s1589_s23 = smov (!%p127_p3), 91   ;;  %s1590_s24 = smov (!%p127_p3), 90  }
   0xc   : > { %v178_v0 = vlaneseq  ;;  %v1579_v1 = vmov 1983009808   ;;  %s1767_s9 = smov (!%p152_p4, %s1569_s9), 1  ;;  %v1580_v5 = vmov 0.0   ;;  %v1581_v6 = vmov 0  }
   0xd   : > { %v176_v2 = vunpack.c.l.s4 %v1579_v1  ;;  %1462 = vmatprep.subr.bf16.mxu1 %v1580_v5  ;;  %249 = vmatprep.mubr.bf16.mxu0 %v1581_v6  ;;  %s1443_s13 = sshll.u32 %s1767_s9, 3  ;;  %vm1582_vm0 = vmmov 0   ;;  %vm199_vm1 = vcmask 1039360   ;;  %vm207_vm2 = vcmask 1041408   ;;  %v1406_v27 = vld [vmem:[%s1759_s0 + $0x4] sm:$0xf] }
   0xe   : > { %v179_v3 = vshrl.u32 %v178_v0, 7  ;;  %s156_s16 = scalar_lea.vmem %s1760_s1, %s1443_s13  ;;  %1464 = vmatprep.mubr.msk.bf16.mxu1 %vm1582_vm0, %v1580_v5  ;;  %vm203_vm3 = vcmask 31744   ;;  %vm437_vm4 = vcmask 1031168   ;;  %v169_v38 = vld [vmem:[%s1759_s0] sm:$0xf]  ;;  %vm566_vm5 = vcmask 900096  }
   0xf   : > { %v177_v4 = vunpack.c.0.s8 %v176_v2  ;;  %v170_v8 = vld [vmem:[%s156_s16] sm:$0xff]  ;;  %v1413_v48 = vld [vmem:[%s1759_s0 + $0x8] sm:$0xf]  ;;  %vm695_vm6 = vcmask 891904   ;;  %v1417_v58 = vld [vmem:[%s1759_s0 + $0xc] sm:$0xf] }
  0x10   : > { %v168_v9 = vld [vmem:[%s156_s16] sm:$0x3f]  ;;  %v174_v11 = vcombine.high %v170_v8, %v170_v8  ;;  %vm824_vm7 = vcmask 883712   ;;  %vm953_vm8 = vcmask 752640   ;;  %vm1082_vm9 = vcmask 744448  }
  0x11   : > { %v180_v7 = vsub.s32 %v177_v4, %v179_v3  ;;  %v299_v13 = vcombine.high %v168_v9, %v168_v9  ;;  %v1421_v4 = vld [vmem:[%s1759_s0 + $0x10] sm:$0xf]  ;;  %vm1211_vm10 = vcmask 736256  }
  0x13   : > { %v181_v10 = vrot.slane %v170_v8, %v180_v7  ;;  %v1634_v12 = vrot.slane %v168_v9, %v180_v7  ;;  %v188_v15 = vrot.slane %v174_v11, %v180_v7  ;;  %v1636_v16 = vrot.slane %v299_v13, %v180_v7 }
  0x15   : > { %191 = vrot.lane.b32.xlu0 %v181_v10, %s1583_s17  ;;  %v189_v14 = vcombine.high %v181_v10, %v181_v10  ;;  %195 = vrot.lane.b32.xlu1 %v188_v15, %s1583_s17  ;;  %v190_v17 = vcombine.high %v188_v15, %v188_v15  ;;  %v314_v21 = vcombine.high %v1634_v12, %v1634_v12  ;;  %v319_v30 = vsel %vm207_vm2, %v1634_v12, 0 }
  0x16   : > { %v325_v32 = vsel %vm207_vm2, %v1636_v16, 0  ;;  %v1425_v16 = vld [vmem:[%s1759_s0 + $0x14] sm:$0xf] }
  0x19   : > { %193 = vrot.lane.b32.xlu0 %v189_v14, %s1583_s17  ;;  %197 = vrot.lane.b32.xlu1 %v190_v17, %s1583_s17 }
  0x1d   : > { %429 = vrot.lane.b32.xlu0 %v181_v10, %s1584_s18  ;;  %431 = vrot.lane.b32.xlu1 %v189_v14, %s1584_s18 }
  0x21   : > { %433 = vrot.lane.b32.xlu0 %v188_v15, %s1584_s18  ;;  %435 = vrot.lane.b32.xlu1 %v190_v17, %s1584_s18 }
  0x25   : > { %558 = vrot.lane.b32.xlu0 %v181_v10, %s1585_s19  ;;  %560 = vrot.lane.b32.xlu1 %v189_v14, %s1585_s19 }
  0x29   : > { %562 = vrot.lane.b32.xlu0 %v188_v15, %s1585_s19  ;;  %564 = vrot.lane.b32.xlu1 %v190_v17, %s1585_s19  ;;  %s1516_s19 = smul.u32 24, %s1767_s9 }
  0x2d   : > { %687 = vrot.lane.b32.xlu0 %v181_v10, %s1586_s20  ;;  %689 = vrot.lane.b32.xlu1 %v189_v14, %s1586_s20 }
  0x31   : > { %691 = vrot.lane.b32.xlu0 %v188_v15, %s1586_s20  ;;  %693 = vrot.lane.b32.xlu1 %v190_v17, %s1586_s20 }
  0x35   : > { %816 = vrot.lane.b32.xlu0 %v181_v10, %s1587_s21  ;;  %818 = vrot.lane.b32.xlu1 %v189_v14, %s1587_s21 }
  0x39   : > { %820 = vrot.lane.b32.xlu0 %v188_v15, %s1587_s21  ;;  %822 = vrot.lane.b32.xlu1 %v190_v17, %s1587_s21 }
  0x3d   : > { %945 = vrot.lane.b32.xlu0 %v181_v10, %s1588_s22  ;;  %947 = vrot.lane.b32.xlu1 %v189_v14, %s1588_s22 }
  0x41   : > { %949 = vrot.lane.b32.xlu0 %v188_v15, %s1588_s22  ;;  %951 = vrot.lane.b32.xlu1 %v190_v17, %s1588_s22  ;;  %s165_s22 = scalar_lea.vmem %s1761_s2, %s1516_s19 }
  0x45   : > { %1074 = vrot.lane.b32.xlu0 %v181_v10, %s1589_s23  ;;  %1076 = vrot.lane.b32.xlu1 %v189_v14, %s1589_s23 }
  0x49   : > { %1078 = vrot.lane.b32.xlu0 %v188_v15, %s1589_s23  ;;  %1080 = vrot.lane.b32.xlu1 %v190_v17, %s1589_s23 }
  0x4d   : > { %1203 = vrot.lane.b32.xlu0 %v181_v10, %s1590_s24  ;;  %1205 = vrot.lane.b32.xlu1 %v189_v14, %s1590_s24 }
  0x51   : > { %1207 = vrot.lane.b32.xlu0 %v188_v15, %s1590_s24  ;;  %1209 = vrot.lane.b32.xlu1 %v190_v17, %s1590_s24 }
  0x87   : > { %v192_v18 = vpop.permute.xlu0 %191  ;;  %v196_v19 = vpop.permute.xlu1 %195 }
  0x8b   : > { %v194_v20 = vpop.permute.xlu0 %193  ;;  %v198_v24 = vpop.permute.xlu1 %197 }
  0x8c   : > { %v201_v22 = vsel %vm199_vm1, %v194_v20, %v196_v19  ;;  %v200_v23 = vsel %vm199_vm1, %v192_v18, %v194_v20  ;;  %v202_v26 = vsel %vm199_vm1, %v196_v19, %v198_v24 }
  0x8d   : > { %1407 = vmatprep.subr.msk.bf16.mxu0 %vm207_vm2, %v201_v22  ;;  %v209_v25 = vsel %vm207_vm2, %v200_v23, 0  ;;  %v215_v28 = vsel %vm207_vm2, %v202_v26, 0  ;;  %v1429_v26 = vld [vmem:[%s1759_s0 + $0x18] sm:$0xf] }
  0x8e   : > { %232 = vmatpush1.bf16.msra.mxu0 %v209_v25  ;;  %1463 = vmatpush3.bf16.msra.mxu1 %v215_v28 }
  0x8f   : > { %v430_v29 = vpop.permute.xlu0 %429  ;;  %1410 = vmatprep.subr.msk.bf16.mxu0 %vm207_vm2, %v314_v21  ;;  %1468 = vmatprep.subr.bf16.mxu1 %v1580_v5  ;;  %v432_v31 = vpop.permute.xlu1 %431 }
  0x90   : > { %v438_v34 = vsel %vm437_vm4, %v430_v29, %v432_v31 }
  0x91   : > { %1408 = vmatmul.mubr.msk.bf16.vlgmr.msra.gmra.mxu0 %vm203_vm3, %v1406_v27  ;;  %1465 = vmatmul.mubr.msk.bf16.vlgmr.msra.gmra.mxu1 %vm203_vm3, %v1406_v27  ;;  %v445_v39 = vsel %vm207_vm2, %v438_v34, 0 }
  0x92   : > { %342 = vmatpush1.bf16.msra.mxu0 %v319_v30  ;;  %359 = vmatprep.mubr.bf16.mxu0 %v1581_v6 }
  0x93   : > { %v434_v33 = vpop.permute.xlu0 %433  ;;  %1469 = vmatpush3.bf16.msra.mxu1 %v325_v32  ;;  %1470 = vmatprep.mubr.msk.bf16.mxu1 %vm1582_vm0, %v1580_v5  ;;  %v436_v36 = vpop.permute.xlu1 %435 }
  0x94   : > { %v439_v35 = vsel %vm437_vm4, %v432_v31, %v434_v33  ;;  %1474 = vmatprep.subr.bf16.mxu1 %v1580_v5  ;;  %v440_v37 = vsel %vm437_vm4, %v434_v33, %v436_v36  ;;  %v1433_v36 = vld [vmem:[%s1759_s0 + $0x1c] sm:$0xf] }
  0x95   : > { %1414 = vmatprep.subr.msk.bf16.mxu0 %vm207_vm2, %v439_v35  ;;  %v451_v41 = vsel %vm207_vm2, %v440_v37, 0 }
  0x97   : > { %v559_v40 = vpop.permute.xlu0 %558  ;;  %v561_v42 = vpop.permute.xlu1 %560 }
  0x98   : > { %v567_v44 = vsel %vm566_vm5, %v559_v40, %v561_v42 }
  0x99   : > { %1411 = vmatmul.mubr.msk.bf16.vlgmr.msra.gmra.mxu0 %vm203_vm3, %v169_v38  ;;  %1471 = vmatmul.mubr.msk.bf16.vlgmr.msra.gmra.mxu1 %vm203_vm3, %v169_v38  ;;  %v574_v49 = vsel %vm207_vm2, %v567_v44, 0 }
  0x9a   : > { %468 = vmatpush1.bf16.msra.mxu0 %v445_v39  ;;  %485 = vmatprep.mubr.bf16.mxu0 %v1581_v6  ;;  %v1437_v39 = vld [vmem:[%s1759_s0 + $0x20] sm:$0xf] }
  0x9b   : > { %v563_v43 = vpop.permute.xlu0 %562  ;;  %1475 = vmatpush3.bf16.msra.mxu1 %v451_v41  ;;  %1476 = vmatprep.mubr.msk.bf16.mxu1 %vm1582_vm0, %v1580_v5  ;;  %v565_v46 = vpop.permute.xlu1 %564 }
  0x9c   : > { %v568_v45 = vsel %vm566_vm5, %v561_v42, %v563_v43  ;;  %1480 = vmatprep.subr.bf16.mxu1 %v1580_v5  ;;  %v569_v47 = vsel %vm566_vm5, %v563_v43, %v565_v46 }
  0x9d   : > { %1418 = vmatprep.subr.msk.bf16.mxu0 %vm207_vm2, %v568_v45  ;;  %v580_v51 = vsel %vm207_vm2, %v569_v47, 0 }
  0x9f   : > { %v688_v50 = vpop.permute.xlu0 %687  ;;  %v690_v52 = vpop.permute.xlu1 %689 }
  0xa0   : > { %v696_v54 = vsel %vm695_vm6, %v688_v50, %v690_v52 }
  0xa1   : > { %1415 = vmatmul.mubr.msk.bf16.vlgmr.msra.gmra.mxu0 %vm203_vm3, %v1413_v48  ;;  %1477 = vmatmul.mubr.msk.bf16.vlgmr.msra.gmra.mxu1 %vm203_vm3, %v1413_v48  ;;  %v703_v59 = vsel %vm207_vm2, %v696_v54, 0 }
  0xa2   : > { %597 = vmatpush1.bf16.msra.mxu0 %v574_v49  ;;  %614 = vmatprep.mubr.bf16.mxu0 %v1581_v6 }
  0xa3   : > { %v692_v53 = vpop.permute.xlu0 %691  ;;  %1481 = vmatpush3.bf16.msra.mxu1 %v580_v51  ;;  %1482 = vmatprep.mubr.msk.bf16.mxu1 %vm1582_vm0, %v1580_v5  ;;  %v694_v56 = vpop.permute.xlu1 %693 }
  0xa4   : > { %v697_v55 = vsel %vm695_vm6, %v690_v52, %v692_v53  ;;  %1486 = vmatprep.subr.bf16.mxu1 %v1580_v5  ;;  %v698_v57 = vsel %vm695_vm6, %v692_v53, %v694_v56 }
  0xa5   : > { %1422 = vmatprep.subr.msk.bf16.mxu0 %vm207_vm2, %v697_v55  ;;  %v709_v61 = vsel %vm207_vm2, %v698_v57, 0 }
  0xa7   : > { %v817_v60 = vpop.permute.xlu0 %816  ;;  %v819_v62 = vpop.permute.xlu1 %818 }
  0xa8   : > { %v825_v0 = vsel %vm824_vm7, %v817_v60, %v819_v62 }
  0xa9   : > { %1419 = vmatmul.mubr.msk.bf16.vlgmr.msra.gmra.mxu0 %vm203_vm3, %v1417_v58  ;;  %1483 = vmatmul.mubr.msk.bf16.vlgmr.msra.gmra.mxu1 %vm203_vm3, %v1417_v58  ;;  %v832_v7 = vsel %vm207_vm2, %v825_v0, 0 }
  0xaa   : > { %726 = vmatpush1.bf16.msra.mxu0 %v703_v59  ;;  %743 = vmatprep.mubr.bf16.mxu0 %v1581_v6 }
  0xab   : > { %v821_v63 = vpop.permute.xlu0 %820  ;;  %1487 = vmatpush3.bf16.msra.mxu1 %v709_v61  ;;  %1488 = vmatprep.mubr.msk.bf16.mxu1 %vm1582_vm0, %v1580_v5  ;;  %v823_v2 = vpop.permute.xlu1 %822 }
  0xac   : > { %v826_v1 = vsel %vm824_vm7, %v819_v62, %v821_v63  ;;  %1492 = vmatprep.subr.bf16.mxu1 %v1580_v5  ;;  %v827_v3 = vsel %vm824_vm7, %v821_v63, %v823_v2 }
  0xad   : > { %1426 = vmatprep.subr.msk.bf16.mxu0 %vm207_vm2, %v826_v1  ;;  %v838_v9 = vsel %vm207_vm2, %v827_v3, 0 }
  0xaf   : > { %v946_v8 = vpop.permute.xlu0 %945  ;;  %v948_v10 = vpop.permute.xlu1 %947 }
  0xb0   : > { %v954_v12 = vsel %vm953_vm8, %v946_v8, %v948_v10 }
  0xb1   : > { %1423 = vmatmul.mubr.msk.bf16.vlgmr.msra.gmra.mxu0 %vm203_vm3, %v1421_v4  ;;  %1489 = vmatmul.mubr.msk.bf16.vlgmr.msra.gmra.mxu1 %vm203_vm3, %v1421_v4  ;;  %v961_v17 = vsel %vm207_vm2, %v954_v12, 0 }
  0xb2   : > { %855 = vmatpush1.bf16.msra.mxu0 %v832_v7  ;;  %872 = vmatprep.mubr.bf16.mxu0 %v1581_v6 }
  0xb3   : > { %v950_v11 = vpop.permute.xlu0 %949  ;;  %1493 = vmatpush3.bf16.msra.mxu1 %v838_v9  ;;  %1494 = vmatprep.mubr.msk.bf16.mxu1 %vm1582_vm0, %v1580_v5  ;;  %v952_v14 = vpop.permute.xlu1 %951 }
  0xb4   : > { %v955_v13 = vsel %vm953_vm8, %v948_v10, %v950_v11  ;;  %1498 = vmatprep.subr.bf16.mxu1 %v1580_v5  ;;  %v956_v15 = vsel %vm953_vm8, %v950_v11, %v952_v14 }
  0xb5   : > { %1430 = vmatprep.subr.msk.bf16.mxu0 %vm207_vm2, %v955_v13  ;;  %v967_v19 = vsel %vm207_vm2, %v956_v15, 0 }
  0xb7   : > { %v1075_v18 = vpop.permute.xlu0 %1074  ;;  %v1077_v20 = vpop.permute.xlu1 %1076 }
  0xb8   : > { %v1083_v22 = vsel %vm1082_vm9, %v1075_v18, %v1077_v20 }
  0xb9   : > { %1427 = vmatmul.mubr.msk.bf16.vlgmr.msra.gmra.mxu0 %vm203_vm3, %v1425_v16  ;;  %1495 = vmatmul.mubr.msk.bf16.vlgmr.msra.gmra.mxu1 %vm203_vm3, %v1425_v16  ;;  %v1090_v27 = vsel %vm207_vm2, %v1083_v22, 0 }
  0xba   : > { %984 = vmatpush1.bf16.msra.mxu0 %v961_v17  ;;  %1001 = vmatprep.mubr.bf16.mxu0 %v1581_v6 }
  0xbb   : > { %v1079_v21 = vpop.permute.xlu0 %1078  ;;  %1499 = vmatpush3.bf16.msra.mxu1 %v967_v19  ;;  %1500 = vmatprep.mubr.msk.bf16.mxu1 %vm1582_vm0, %v1580_v5  ;;  %v1081_v24 = vpop.permute.xlu1 %1080 }
  0xbc   : > { %v1084_v23 = vsel %vm1082_vm9, %v1077_v20, %v1079_v21  ;;  %1504 = vmatprep.subr.bf16.mxu1 %v1580_v5  ;;  %v1085_v25 = vsel %vm1082_vm9, %v1079_v21, %v1081_v24 }
  0xbd   : > { %1434 = vmatprep.subr.msk.bf16.mxu0 %vm207_vm2, %v1084_v23  ;;  %v1096_v29 = vsel %vm207_vm2, %v1085_v25, 0 }
  0xbf   : > { %v1204_v28 = vpop.permute.xlu0 %1203  ;;  %v1206_v30 = vpop.permute.xlu1 %1205 }
  0xc0   : > { %v1212_v32 = vsel %vm1211_vm10, %v1204_v28, %v1206_v30 }
  0xc1   : > { %1431 = vmatmul.mubr.msk.bf16.vlgmr.msra.gmra.mxu0 %vm203_vm3, %v1429_v26  ;;  %1501 = vmatmul.mubr.msk.bf16.vlgmr.msra.gmra.mxu1 %vm203_vm3, %v1429_v26  ;;  %v1219_v37 = vsel %vm207_vm2, %v1212_v32, 0 }
  0xc2   : > { %1113 = vmatpush1.bf16.msra.mxu0 %v1090_v27  ;;  %1130 = vmatprep.mubr.bf16.mxu0 %v1581_v6 }
  0xc3   : > { %v1208_v31 = vpop.permute.xlu0 %1207  ;;  %1505 = vmatpush3.bf16.msra.mxu1 %v1096_v29  ;;  %1506 = vmatprep.mubr.msk.bf16.mxu1 %vm1582_vm0, %v1580_v5  ;;  %v1210_v34 = vpop.permute.xlu1 %1209 }
  0xc4   : > { %v1213_v33 = vsel %vm1211_vm10, %v1206_v30, %v1208_v31  ;;  %1510 = vmatprep.subr.bf16.mxu1 %v1580_v5  ;;  %v1214_v35 = vsel %vm1211_vm10, %v1208_v31, %v1210_v34 }
  0xc5   : > { %1438 = vmatprep.subr.msk.bf16.mxu0 %vm207_vm2, %v1213_v33  ;;  %v1225_v38 = vsel %vm207_vm2, %v1214_v35, 0 }
  0xc9   : > { %1435 = vmatmul.mubr.msk.bf16.vlgmr.msra.gmra.mxu0 %vm203_vm3, %v1433_v36  ;;  %1507 = vmatmul.mubr.msk.bf16.vlgmr.msra.gmra.mxu1 %vm203_vm3, %v1433_v36 }
  0xca   : > { %1242 = vmatpush1.bf16.msra.mxu0 %v1219_v37  ;;  %1259 = vmatprep.mubr.bf16.mxu0 %v1581_v6 }
  0xcb   : > { %1511 = vmatpush3.bf16.msra.mxu1 %v1225_v38  ;;  %1512 = vmatprep.mubr.msk.bf16.mxu1 %vm1582_vm0, %v1580_v5 }
  0xd1   : > { %1439 = vmatmul.mubr.msk.bf16.vlgmr.msra.gmra.mxu0 %vm203_vm3, %v1437_v39  ;;  %1513 = vmatmul.mubr.msk.bf16.vlgmr.msra.gmra.mxu1 %vm203_vm3, %v1437_v39 }
 0x151   : > { %v251_v40 = vpop.f32.mrf.mxu0  ;;  %v292_v42 = vpop.f32.mrf.mxu1 }
 0x153   : > { %v253_v41 = vpop.f32.mrf.mxu0  ;;  %v1466_v44 = vpop.f32.mrf.mxu1 }
 0x155   : > { %v255_v43 = vpop.f32.mrf.mxu0  ;;  %v295_v45 = vpop.f32.mrf.mxu1 }
 0x157   : > { %v256_v6 = vpop.f32.mrf.mxu0  ;;  %v1467_v46 = vpop.f32.mrf.mxu1 }
 0x159   : > { %v361_v47 = vpop.f32.mrf.mxu0  ;;  %v402_v49 = vpop.f32.mrf.mxu1 }
 0x15a   : > { %v362_v27 = vadd.f32 %v361_v47, %v251_v40  ;;  %v403_v31 = vadd.f32 %v402_v49, %v292_v42 }
 0x15b   : > { %v363_v48 = vpop.f32.mrf.mxu0  ;;  %v1472_v50 = vpop.f32.mrf.mxu1 }
 0x15c   : > { %v364_v30 = vadd.f32 %v363_v48, %v253_v41 }
 0x15d   : > { %v365_v5 = vpop.f32.mrf.mxu0  ;;  %v405_v52 = vpop.f32.mrf.mxu1 }
 0x15f   : > { %v366_v51 = vpop.f32.mrf.mxu0  ;;  %v1473_v53 = vpop.f32.mrf.mxu1 }
 0x161   : > { %v487_v54 = vpop.f32.mrf.mxu0  ;;  %v528_v56 = vpop.f32.mrf.mxu1 }
 0x162   : > { %v534_v32 = vadd.f32 %v487_v54, %v362_v27  ;;  %v536_v36 = vadd.f32 %v528_v56, %v403_v31 }
 0x163   : > { %v489_v55 = vpop.f32.mrf.mxu0  ;;  %v1478_v58 = vpop.f32.mrf.mxu1 }
 0x164   : > { %v535_v35 = vadd.f32 %v489_v55, %v364_v30 }
 0x165   : > { %v491_v57 = vpop.f32.mrf.mxu0  ;;  %v531_v60 = vpop.f32.mrf.mxu1 }
 0x167   : > { %v492_v59 = vpop.f32.mrf.mxu0  ;;  %v1479_v61 = vpop.f32.mrf.mxu1 }
 0x169   : > { %v616_v62 = vpop.f32.mrf.mxu0  ;;  %v657_v0 = vpop.f32.mrf.mxu1 }
 0x16a   : > { %v663_v37 = vadd.f32 %v616_v62, %v534_v32  ;;  %v665_v44 = vadd.f32 %v657_v0, %v536_v36 }
 0x16b   : > { %v618_v63 = vpop.f32.mrf.mxu0  ;;  %v1484_v2 = vpop.f32.mrf.mxu1 }
 0x16c   : > { %v664_v43 = vadd.f32 %v618_v63, %v535_v35 }
 0x16d   : > { %v620_v1 = vpop.f32.mrf.mxu0  ;;  %v660_v4 = vpop.f32.mrf.mxu1 }
 0x16f   : > { %v621_v3 = vpop.f32.mrf.mxu0  ;;  %v1485_v7 = vpop.f32.mrf.mxu1 }
 0x171   : > { %v745_v8 = vpop.f32.mrf.mxu0  ;;  %v786_v10 = vpop.f32.mrf.mxu1 }
 0x172   : > { %v792_v6 = vadd.f32 %v745_v8, %v663_v37  ;;  %v794_v40 = vadd.f32 %v786_v10, %v665_v44 }
 0x173   : > { %v747_v9 = vpop.f32.mrf.mxu0  ;;  %v1490_v12 = vpop.f32.mrf.mxu1 }
 0x174   : > { %v793_v5 = vadd.f32 %v747_v9, %v664_v43 }
 0x175   : > { %v749_v11 = vpop.f32.mrf.mxu0  ;;  %v789_v14 = vpop.f32.mrf.mxu1 }
 0x177   : > { %v750_v13 = vpop.f32.mrf.mxu0  ;;  %v1491_v15 = vpop.f32.mrf.mxu1 }
 0x179   : > { %v874_v16 = vpop.f32.mrf.mxu0  ;;  %v915_v18 = vpop.f32.mrf.mxu1 }
 0x17a   : > { %v921_v47 = vadd.f32 %v874_v16, %v792_v6  ;;  %v923_v48 = vadd.f32 %v915_v18, %v794_v40 }
 0x17b   : > { %v876_v17 = vpop.f32.mrf.mxu0  ;;  %v1496_v20 = vpop.f32.mrf.mxu1 }
 0x17c   : > { %v922_v42 = vadd.f32 %v876_v17, %v793_v5 }
 0x17d   : > { %v878_v19 = vpop.f32.mrf.mxu0  ;;  %v918_v22 = vpop.f32.mrf.mxu1 }
 0x17f   : > { %v879_v21 = vpop.f32.mrf.mxu0  ;;  %v1497_v23 = vpop.f32.mrf.mxu1 }
 0x181   : > { %v1003_v24 = vpop.f32.mrf.mxu0  ;;  %v1044_v26 = vpop.f32.mrf.mxu1 }
 0x182   : > { %v1050_v49 = vadd.f32 %v1003_v24, %v921_v47  ;;  %v1052_v54 = vadd.f32 %v1044_v26, %v923_v48 }
 0x183   : > { %v1005_v25 = vpop.f32.mrf.mxu0  ;;  %v1502_v29 = vpop.f32.mrf.mxu1 }
 0x184   : > { %v1051_v53 = vadd.f32 %v1005_v25, %v922_v42 }
 0x185   : > { %v1007_v28 = vpop.f32.mrf.mxu0  ;;  %v1047_v34 = vpop.f32.mrf.mxu1 }
 0x187   : > { %v1008_v33 = vpop.f32.mrf.mxu0  ;;  %v1503_v38 = vpop.f32.mrf.mxu1 }
 0x189   : > { %v1132_v39 = vpop.f32.mrf.mxu0  ;;  %v1173_v46 = vpop.f32.mrf.mxu1 }
 0x18a   : > { %v1179_v55 = vadd.f32 %v1132_v39, %v1050_v49  ;;  %v1181_v59 = vadd.f32 %v1173_v46, %v1052_v54 }
 0x18b   : > { %v1134_v45 = vpop.f32.mrf.mxu0  ;;  %v1508_v41 = vpop.f32.mrf.mxu1 }
 0x18c   : > { %v1180_v58 = vadd.f32 %v1134_v45, %v1051_v53 }
 0x18d   : > { %v1136_v50 = vpop.f32.mrf.mxu0  ;;  %v1176_v52 = vpop.f32.mrf.mxu1 }
 0x18f   : > { %v1137_v51 = vpop.f32.mrf.mxu0  ;;  %v1509_v56 = vpop.f32.mrf.mxu1 }
 0x191   : > { %v1261_v57 = vpop.f32.mrf.mxu0  ;;  %v1302_v62 = vpop.f32.mrf.mxu1 }
 0x192   : > { %v1308_v60 = vadd.f32 %v1261_v57, %v1179_v55  ;;  %v1310_v1 = vadd.f32 %v1302_v62, %v1181_v59 }
 0x193   : > { %v1263_v61 = vpop.f32.mrf.mxu0  ;;  %v1514_v3 = vpop.f32.mrf.mxu1 }
 0x194   : > { %v1311_v63 = vmax.f32 %v1308_v60, 0.0  ;;  %v1309_v0 = vadd.f32 %v1263_v61, %v1180_v58  ;;  %v1313_v7 = vmax.f32 %v1310_v1, 0.0 }
 0x195   : > { %v1265_v2 = vpop.f32.mrf.mxu0  ;;  %v1305_v9 = vpop.f32.mrf.mxu1 }
 0x196   : > { %1314 = vst [vmem:[%s165_s22] sm:$0xff] %v1311_v63  ;;  %v1312_v4 = vmax.f32 %v1309_v0, 0.0  ;;  %1316 = vst [vmem:[%s165_s22 + $0x10] sm:$0xff] %v1313_v7 }
 0x197   : > { %v1266_v8 = vpop.f32.mrf.mxu0  ;;  %v1515_v10 = vpop.f32.mrf.mxu1 }
 0x198   : > { %1315 = vst [vmem:[%s165_s22 + $0x8] sm:$0xff] %v1312_v4 }
 0x199 PF: > { %s12_s11 = sadd.s32 1, %s1577_s11   ;;  %s1762_s9 = smov %s1573_s10 }
 0x19a   : > { %p9_p5 = scmp.ge.s32.totalorder %s12_s11, 4   ;;  %s1763_s10 = smov %s1765_s12 }
 0x19c   :  { %11 = sbr.rel (!%p9_p5) target bundleno = 2 (0x2), region = 66 }

</bundles_post_ra>
